<compile_context>
chip_gen: v7x
topology: tpu7x:2x2x1
jax: 0.10.0
libtpu: 0.0.40
codegen_flags: <defaults>
</compile_context>

<pallas_src>
import jax
import jax.numpy as jnp
from jax.experimental import pallas as pl
from jax.experimental.pallas import tpu as pltpu


# ---------------------------------------------------------------------------
# Pallas kernel: one (bt, tt, v) block of spectrograms, masked in one shot.
# ---------------------------------------------------------------------------
def _specaug_kernel(x_ref, fkeep_ref, tkeep_ref, o_ref):
    # (bt, 1, v) * (bt, tt, 1)  ->  (bt, tt, v) combined keep mask (int32 0/1).
    keep = fkeep_ref[...] * tkeep_ref[...]
    # Masked positions are set to exactly 0 (matches the reference, even for
    # non-finite inputs), everything else is copied through unchanged.
    o_ref[...] = jnp.where(keep != 0, x_ref[...], jnp.zeros((), o_ref.dtype))


# ---------------------------------------------------------------------------
# Parameter sampling + tiny per-axis keep masks (vectorized; mirrors
# np.random.uniform / random.randint / random.random of the reference).
# ---------------------------------------------------------------------------
def _make_keep_masks(key, batch, tau, v, freq_para, time_para, fnum, tnum, rate):
    k_apply, k_f, k_f0, k_t, k_t0 = jax.random.split(key, 5)

    # Per-sample "random.random() < rate" gate.
    applied = jax.random.uniform(k_apply, (batch,)) < rate  # (B,) bool

    # Frequency masks: f = int(uniform(0, F)); f0 = randint(0, v - f) inclusive.
    f = jnp.floor(jax.random.uniform(
        k_f, (batch, fnum), minval=0.0, maxval=float(freq_para))
    ).astype(jnp.int32)
    f = jnp.minimum(f, v)  # guard F > v so the randint range stays valid
    f0 = jax.random.randint(
        k_f0, (batch, fnum), 0, jnp.maximum(v - f + 1, 1), dtype=jnp.int32)

    # Time masks: t = int(uniform(1, min(T, tau))); t0 = randint(0, tau - t).
    t_hi = max(float(min(time_para, tau)), 1.0)  # guard tau <= 1 / T <= 1
    t = jnp.floor(jax.random.uniform(
        k_t, (batch, tnum), minval=1.0, maxval=t_hi)).astype(jnp.int32)
    t = jnp.minimum(t, tau)
    t0 = jax.random.randint(
        k_t0, (batch, tnum), 0, jnp.maximum(tau - t + 1, 1), dtype=jnp.int32)

    # Tiny per-axis masked-index sets (B, v) / (B, tau) -> keep masks.
    col = jnp.arange(v, dtype=jnp.int32)[None, None, :]            # (1,1,v)
    fbad = jnp.any((col >= f0[:, :, None]) &
                   (col < (f0 + f)[:, :, None]), axis=1)           # (B, v)
    row = jnp.arange(tau, dtype=jnp.int32)[None, None, :]          # (1,1,tau)
    tbad = jnp.any((row >= t0[:, :, None]) &
                   (row < (t0 + t)[:, :, None]), axis=1)           # (B, tau)

    fkeep = jnp.logical_not(fbad & applied[:, None]).astype(jnp.int32)[:, None, :]  # (B,1,v)
    tkeep = jnp.logical_not(tbad & applied[:, None]).astype(jnp.int32)[:, :, None]  # (B,tau,1)
    return fkeep, tkeep


# ---------------------------------------------------------------------------
# Wrapper: SpecAugment.forward over a batch of spectrograms.
# ---------------------------------------------------------------------------
def spec_augment(x, key, *, frequency_masking_pars=27, time_masking_pars=100,
                 frequency_masking_num=1, time_masking_num=1, rate=1.0,
                 block_bytes_target=4 * 1024 * 1024):
    batch, tau, v = x.shape
    fnum, tnum = frequency_masking_num, time_masking_num

    fkeep, tkeep = _make_keep_masks(key, batch, tau, v, frequency_masking_pars,
                                    time_masking_pars, fnum, tnum, rate)

    # ------------------------------------------------------------------
    # Tile sizing: purely by VMEM byte budget. No host-side padding of the
    # mel or batch axes (Pallas handles the non-divisible edge blocks).
    # ------------------------------------------------------------------
    itemsize = jnp.dtype(x.dtype).itemsize
    row_bytes = max(v * itemsize, 1)
    sample_bytes = tau * row_bytes

    if sample_bytes <= block_bytes_target:
        # Whole utterances per block; pack as many samples as the budget allows.
        tt = tau
        bt = max(1, min(batch, block_bytes_target // sample_bytes))
    else:
        # Long utterances: tile the time axis too (multiple of 8 sublanes).
        bt = 1
        tt_cap = max(1, block_bytes_target // row_bytes)
        tt = tau if tau <= tt_cap else max(8, (tt_cap // 8) * 8)

    # v7x has 2 TensorCores: make sure there are >= 2 grid blocks to shard.
    if pl.cdiv(batch, bt) * pl.cdiv(tau, tt) < 2 and batch >= 2:
        bt = pl.cdiv(batch, 2)

    num_b = pl.cdiv(batch, bt)
    num_t = pl.cdiv(tau, tt)

    # in + out blocks, double-buffered, plus headroom for the small masks.
    block_bytes = bt * tt * v * itemsize
    vmem_limit = int(min(60 * 1024 * 1024,
                         max(32 * 1024 * 1024, 4 * block_bytes + 8 * 1024 * 1024)))

    out = pl.pallas_call(
        _specaug_kernel,
        out_shape=jax.ShapeDtypeStruct((batch, tau, v), x.dtype),
        grid=(num_b, num_t),
        in_specs=[
            pl.BlockSpec((bt, tt, v), lambda g, h: (g, h, 0)),   # x
            pl.BlockSpec((bt, 1, v), lambda g, h: (g, 0, 0)),    # fkeep
            pl.BlockSpec((bt, tt, 1), lambda g, h: (g, h, 0)),   # tkeep
        ],
        out_specs=pl.BlockSpec((bt, tt, v), lambda g, h: (g, h, 0)),
        compiler_params=pltpu.CompilerParams(
            dimension_semantics=("parallel", "parallel"),
            vmem_limit_bytes=vmem_limit),
    )(x, fkeep, tkeep)
    return out


if __name__ == "__main__":
    key = jax.random.PRNGKey(0)
    k_data, k_aug = jax.random.split(key)

    # Batch of mel spectrograms: (B, tau, v) = (4, 64, 80) — non-128-aligned
    # mel axis on purpose (no host-side padding path anymore).
    x = jax.random.normal(k_data, (4, 64, 80), dtype=jnp.float32)

    out = spec_augment(
        x, k_aug,
        frequency_masking_pars=27,
        time_masking_pars=100,
        frequency_masking_num=1,
        time_masking_num=1,
        rate=1.0,
    )
    jax.block_until_ready(out)

    assert out.shape == x.shape and out.dtype == x.dtype
    # Every output element is either the original value or an exact 0 (masked).
    assert bool(jnp.all((out == x) | (out == 0)))
    # With rate=1.0 at least one time row is masked per sample.
    assert not bool(jnp.array_equal(out, x))
    print("KERNEL_OK")
</pallas_src>

<mosaic_0001>
module attributes {stable_mosaic.version = 11 : i64} {
  func.func @_specaug_kernel(%arg0: i32, %arg1: i32, %arg2: memref<2x64x80xf32, #tpu.memory_space<vmem>>, %arg3: memref<2x1x80xi32, #tpu.memory_space<vmem>>, %arg4: memref<2x64x1xi32, #tpu.memory_space<vmem>>, %arg5: memref<2x64x80xf32, #tpu.memory_space<vmem>>) attributes {dimension_semantics = [#tpu.dimension_semantics<parallel>, #tpu.dimension_semantics<parallel>], iteration_bounds = array<i64: 2, 1>, scalar_prefetch = 0 : i64, scratch_operands = 0 : i64, tpu.core_type = #tpu.core_type<tc>, window_params = [{transform_indices = @transform_0, window_bounds = array<i64: 2, 64, 80>}, {transform_indices = @transform_1, window_bounds = array<i64: 2, 1, 80>}, {transform_indices = @transform_2, window_bounds = array<i64: 2, 64, 1>}, {transform_indices = @transform_3, window_bounds = array<i64: 2, 64, 80>}]} {
    %c0 = arith.constant 0 : index
    %c0_0 = arith.constant 0 : index
    %c0_1 = arith.constant 0 : index
    %0 = vector.load %arg3[%c0, %c0_0, %c0_1] : memref<2x1x80xi32, #tpu.memory_space<vmem>>, vector<2x1x80xi32>
    %c0_2 = arith.constant 0 : index
    %c0_3 = arith.constant 0 : index
    %c0_4 = arith.constant 0 : index
    %1 = vector.load %arg4[%c0_2, %c0_3, %c0_4] : memref<2x64x1xi32, #tpu.memory_space<vmem>>, vector<2x64x1xi32>
    %2 = vector.broadcast %0 : vector<2x1x80xi32> to vector<2x64x80xi32>
    %3 = vector.broadcast %1 : vector<2x64x1xi32> to vector<2x64x80xi32>
    %4 = arith.muli %2, %3 : vector<2x64x80xi32>
    %c0_i32 = arith.constant 0 : i32
    %5 = vector.broadcast %c0_i32 : i32 to vector<2x64x80xi32>
    %6 = arith.cmpi ne, %4, %5 : vector<2x64x80xi32>
    %c0_5 = arith.constant 0 : index
    %c0_6 = arith.constant 0 : index
    %c0_7 = arith.constant 0 : index
    %7 = vector.load %arg2[%c0_5, %c0_6, %c0_7] : memref<2x64x80xf32, #tpu.memory_space<vmem>>, vector<2x64x80xf32>
    %cst = arith.constant 0.000000e+00 : f32
    %8 = vector.broadcast %cst : f32 to vector<2x64x80xf32>
    %9 = arith.select %6, %7, %8 : vector<2x64x80xi1>, vector<2x64x80xf32>
    %c0_8 = arith.constant 0 : index
    %c0_9 = arith.constant 0 : index
    %c0_10 = arith.constant 0 : index
    %10 = vector.load %arg5[%c0_8, %c0_9, %c0_10] : memref<2x64x80xf32, #tpu.memory_space<vmem>>, vector<2x64x80xf32>
    tpu.vector_store %arg5[%c0_8, %c0_9, %c0_10], %9 {strides = array<i32>} : memref<2x64x80xf32, #tpu.memory_space<vmem>>, vector<2x64x80xf32>,
    return
  }
  func.func @transform_0(%arg0: i32, %arg1: i32) -> (i32, i32, i32) {
    %c0_i32 = arith.constant 0 : i32
    %c0_i32_0 = arith.constant 0 : i32
    return %arg0, %arg1, %c0_i32 : i32, i32, i32
  }
  func.func @transform_1(%arg0: i32, %arg1: i32) -> (i32, i32, i32) {
    %c0_i32 = arith.constant 0 : i32
    %c0_i32_0 = arith.constant 0 : i32
    %c0_i32_1 = arith.constant 0 : i32
    return %arg0, %c0_i32, %c0_i32_0 : i32, i32, i32
  }
  func.func @transform_2(%arg0: i32, %arg1: i32) -> (i32, i32, i32) {
    %c0_i32 = arith.constant 0 : i32
    %c0_i32_0 = arith.constant 0 : i32
    return %arg0, %arg1, %c0_i32 : i32, i32, i32
  }
  func.func @transform_3(%arg0: i32, %arg1: i32) -> (i32, i32, i32) {
    %c0_i32 = arith.constant 0 : i32
    %c0_i32_0 = arith.constant 0 : i32
    return %arg0, %arg1, %c0_i32 : i32, i32, i32
  }
}

</mosaic_0001>

<bundles_post_ra>
// kernel: tpu_custom_call.1
= control target key start
LH: loop header
LB: loop body
LE: loop exit
PB: predicated region body
PF: predicated region fallthrough
CT: control target
= control target key end

     0   :  { %8 = vsyncpa [#allocation3], 0  ;;  %s922_s0 = inlined_call_operand.vmem [shape: f32[4,64,80], index: 0, kind: input, shape index: {}]   ;;  %s923_s1 = inlined_call_operand.vmem [shape: s32[4,1,80], index: 1, kind: input, shape index: {}]   ;;  %s924_s2 = inlined_call_operand.vmem [shape: s32[4,64,1], index: 2, kind: input, shape index: {}]   ;;  %s925_s3 = inlined_call_operand.hbm [shape: f32[4,64,80], index: 3, kind: output, shape index: {}]  }
   0x1   :  { %10 = vsyncpa [#allocation3 + $0x1], 0  ;;  %s733_s12 = smov 0   ;;  %s735_s13 = smov 0  }
   0x2   :  { %s737_s14 = smov 0   ;;  %s739_s15 = smov 0  }
   0x3   :  { %s741_s16 = smov 0   ;;  %s743_s17 = smov 0  }
   0x4 LB: > { %s544_s18 = sadd.s32 4294967295, %s707_s17   ;;  %s545_s19 = sadd.s32 4294967294, %s707_s17   ;;  %s707_s17 = sphi %s743_s17, %s16_s17   ;;  %s703_s16 = sphi %s741_s16, %s932_s16   ;;  %s699_s15 = sphi %s739_s15, %s931_s15   ;;  %s695_s14 = sphi %s737_s14, %s930_s14   ;;  %s691_s13 = sphi %s735_s13, %s929_s13   ;;  %s687_s12 = sphi %s733_s12, %s928_s12  }
   0x5   : > { %s28_s20 = sadd.s32 1, %s703_s16  ;;  %s119_s21 = sadd.s32 1, %s695_s14 }
   0x6   : > { %p30_p0 = scmp.ge.s32.totalorder %s28_s20, 2  ;;  %p129_p1 = scmp.ne.s32.totalorder %s695_s14, %s691_s13 }
   0x7   : > { %p130_p2 = scmp.eq.s32.totalorder %s544_s18, 1  ;;  %p135_p3 = scmp.ne.s32.totalorder %s691_s13, %s687_s12 }
   0x8   : > { %s934_s20 = smov (%p30_p0, %s28_s20), 0  ;;  %p136_p5 = scmp.eq.s32.totalorder %s545_s19, 1 }
   0x9   : > { %p773_p4 = por %p130_p2, %p129_p1  ;;  %s114_s23 = ssub.s32 %s703_s16, %s934_s20 }
   0xa   : > { %p548_p6 = scmp.ge.s32.totalorder %s707_s17, 1  ;;  %p117_p7 = scmp.eq.s32.totalorder %s114_s23, 0 }
   0xb   : > { %p780_p8 = por %p136_p5, %p135_p3  ;;  %p192_p9 = scmp.lt.s32.totalorder %s707_s17, 3 }
   0xc   : > { %s786_s25 = scalar_select %p117_p7, %s695_s14, %s119_s21  }
   0xd   : > { %p193_p10 = pnand %p548_p6, %p192_p9 }
   0xe   : > { %s550_s26 = sshll.u32 (!%p193_p10), %s699_s15, 1  ;;  %v709_v0 = vmov (!%p193_p10), 0   ;;  %s232_s7 = sand.u32 (!%p193_p10), 1, %s691_s13   ;;  %vm404_vm0 = vcmask (!%p193_p10), 654336  }
   0xf   : > { %196 = sbr.rel (%p193_p10) target bundleno = 201 (0xc9), region = 32  ;;  %628 = vset.pattern.permute.xlu1 (!%p193_p10), %v709_v0  ;;  %627 = vset.pattern.permute.xlu0 (!%p193_p10), %v709_v0  ;;  %p237_p11 = scmp.lt.s32.totalorder (!%p193_p10), %s550_s26, 3 }
  0x10   : > { %s549_s11 = sshll.u32 (!%p193_p10), %s232_s7, 7  ;;  %s568_s19 = sshll.u32 (!%p193_p10), %s699_s15, 11 }
  0x11   : > { %s816_s18 = scalar_lea.vmem (!%p193_p10), [#allocation2], %s549_s11  ;;  %s866_s15 = scalar_lea.hbm (!%p193_p10), %s925_s3, %s568_s19 }
  0x12   : > { %s438_s21 = sshll.u32 (!%p193_p10), %s816_s18, 4  ;;  %s710_s29 = smov (!%p193_p10), [#allocation2]   ;;  %s868_s21 = int_to_ptr.vmem [resolvable:$true] %s438_s21 }
  0x13   : > { %s629_s28 = scalar_lea.vmem (!%p193_p10), %s868_s21, 2048 }
  0x14   : > { %p630_p12 = scmp.ne.s32.totalorder (!%p193_p10), %s868_s21, %s629_s28 }
  0x16   : > { %s936_s26 = smov (!%p237_p11, %s550_s26), 3  ;;  %p631_p13 = pnand %p630_p12, %p773_p4 }
  0x17   : > { %s565_s27 = sshll.u32 %s936_s26, 6  ;;  %s801_s6 = scalar_lea.vmem %s923_s1, %s936_s26 }
  0x18   : > { %s261_s30 = scalar_lea.vmem %s924_s2, %s565_s27  ;;  %s809_s10 = scalar_lea.vmem %s922_s0, %s565_s27  ;;  %v557_v17 = vld [vmem:[%s801_s6] ss:$0 sm:$0xff]  ;;  %v558_v48 = vld [vmem:[%s801_s6 + $0x1] ss:$0 sm:$0xff] }
  0x19   : > { %v270_v1 = vld [vmem:[%s261_s30 + $0x10] sm:$0xff]  ;;  %v268_v2 = vld [vmem:[%s261_s30] sm:$0xff]  ;;  %v271_v3 = vld [vmem:[%s261_s30 + $0x18] sm:$0xff]  ;;  %s876_s27 = scalar_lea.sflag [#allocation3], %s232_s7  ;;  %p632_p0 = pneg %p631_p13 }
  0x1a   : > { %299 = vperm.xlu1 %628, %v270_v1   ;;  %293 = vperm.xlu0 %627, %v268_v2   ;;  %v269_v4 = vld [vmem:[%s261_s30 + $0x8] sm:$0xff]  ;;  %v272_v6 = vld [vmem:[%s261_s30 + $0x20] sm:$0xff]  ;;  %v275_v7 = vld [vmem:[%s261_s30 + $0x38] sm:$0xff] }
  0x1b   : > { %v273_v5 = vld [vmem:[%s261_s30 + $0x28] sm:$0xff]  ;;  %v274_v8 = vld [vmem:[%s261_s30 + $0x30] sm:$0xff]  ;;  %v276_v10 = vld [vmem:[%s261_s30 + $0x40] sm:$0xff] }
  0x1c   : > { %v277_v9 = vld [vmem:[%s261_s30 + $0x48] sm:$0xff]  ;;  %v279_v11 = vld [vmem:[%s261_s30 + $0x58] sm:$0xff]  ;;  %v278_v12 = vld [vmem:[%s261_s30 + $0x50] sm:$0xff] }
  0x1d   : > { %v281_v13 = vld [vmem:[%s261_s30 + $0x68] sm:$0xff]  ;;  %v280_v14 = vld [vmem:[%s261_s30 + $0x60] sm:$0xff]  ;;  %v283_v15 = vld [vmem:[%s261_s30 + $0x78] sm:$0xff] }
  0x1e   : > { %302 = vperm.xlu1 %628, %v271_v3   ;;  %296 = vperm.xlu0 %627, %v269_v4   ;;  %v282_v16 = vld [vmem:[%s261_s30 + $0x70] sm:$0xff]  ;;  %v372_v23 = vld [vmem:[%s809_s10] sm:$0xff]  ;;  %v375_v29 = vld [vmem:[%s809_s10 + $0x18] sm:$0xff]  ;;  %s633_s30 = sshll.u32 %s710_s29, 4  ;;  %s634_s30 = int_to_ptr.vmem [resolvable:$false] %s633_s30 }
  0x1f   : > { %v374_v21 = vld [vmem:[%s809_s10 + $0x10] sm:$0xff]  ;;  %v373_v31 = vld [vmem:[%s809_s10 + $0x8] sm:$0xff]  ;;  %v376_v39 = vld [vmem:[%s809_s10 + $0x20] sm:$0xff]  ;;  %s635_s4 = scalar_lea.vmem %s634_s30, 4096  ;;  %p636_p1 = scmp.lt.s32.totalorder %s868_s21, %s634_s30 }
  0x20   : > { %v377_v37 = vld [vmem:[%s809_s10 + $0x28] sm:$0xff]  ;;  %v379_v45 = vld [vmem:[%s809_s10 + $0x38] sm:$0xff]  ;;  %v378_v47 = vld [vmem:[%s809_s10 + $0x30] sm:$0xff]  ;;  %p637_p2 = scmp.lt.s32.totalorder %s635_s4, %s629_s28 }
  0x21   : > { %v381_v54 = vld [vmem:[%s809_s10 + $0x48] sm:$0xff]  ;;  %v380_v56 = vld [vmem:[%s809_s10 + $0x40] sm:$0xff]  ;;  %v383_v62 = vld [vmem:[%s809_s10 + $0x58] sm:$0xff] }
  0x22   : > { %308 = vperm.xlu1 %628, %v273_v5   ;;  %305 = vperm.xlu0 %627, %v272_v6   ;;  %v382_v0 = vld [vmem:[%s809_s10 + $0x50] sm:$0xff]  ;;  %v385_v6 = vld [vmem:[%s809_s10 + $0x68] sm:$0xff]  ;;  %p638_p3 = por %p637_p2, %p636_p1 }
  0x24   : > { %p639_p5 = pnand %p638_p3, %p632_p0 }
  0x26   : > { %314 = vperm.xlu1 %628, %v275_v7   ;;  %311 = vperm.xlu0 %627, %v274_v8   ;;  %v384_v8 = vld [vmem:[%s809_s10 + $0x60] sm:$0xff] }
  0x2a   : > { %320 = vperm.xlu1 %628, %v277_v9   ;;  %317 = vperm.xlu0 %627, %v276_v10  }
  0x2e   : > { %326 = vperm.xlu1 %628, %v279_v11   ;;  %323 = vperm.xlu0 %627, %v278_v12  }
  0x32   : > { %332 = vperm.xlu1 %628, %v281_v13   ;;  %329 = vperm.xlu0 %627, %v280_v14   ;;  %v387_v14 = vld [vmem:[%s809_s10 + $0x78] sm:$0xff] }
  0x36   : > { %338 = vperm.xlu1 %628, %v283_v15   ;;  %335 = vperm.xlu0 %627, %v282_v16   ;;  %v386_v16 = vld [vmem:[%s809_s10 + $0x70] sm:$0xff] }
  0x99   : > { %v300_v18 = vpop.permute.xlu1 %299  ;;  %v294_v19 = vpop.permute.xlu0 %293 }
  0x9a   : > { %v342_v20 = vmul.u32 %v557_v17, %v300_v18  ;;  %v340_v22 = vmul.u32 %v557_v17, %v294_v19 }
  0x9c   : > { %vm358_vm1 = vcmp.ne.s32.totalorder %v342_v20, 0  ;;  %vm356_vm2 = vcmp.ne.s32.totalorder %v340_v22, 0 }
  0x9d   : > { %v390_v24 = vsel %vm358_vm1, %v374_v21, 0.0  ;;  %v388_v25 = vsel %vm356_vm2, %v372_v23, 0.0  ;;  %v303_v26 = vpop.permute.xlu1 %302  ;;  %v297_v27 = vpop.permute.xlu0 %296 }
  0x9e   : > { %407 = vst.msk [vmem:[%s816_s18 + $0x10] sm:$0xff] %vm404_vm0, %v390_v24  ;;  %405 = vst.msk [vmem:[%s816_s18] sm:$0xff] %vm404_vm0, %v388_v25  ;;  %v343_v28 = vmul.u32 %v557_v17, %v303_v26  ;;  %v341_v30 = vmul.u32 %v557_v17, %v297_v27 }
  0xa0   : > { %vm359_vm3 = vcmp.ne.s32.totalorder %v343_v28, 0  ;;  %vm357_vm4 = vcmp.ne.s32.totalorder %v341_v30, 0 }
  0xa1   : > { %v391_v32 = vsel %vm359_vm3, %v375_v29, 0.0  ;;  %v389_v33 = vsel %vm357_vm4, %v373_v31, 0.0  ;;  %v309_v34 = vpop.permute.xlu1 %308  ;;  %v306_v35 = vpop.permute.xlu0 %305 }
  0xa2   : > { %408 = vst.msk [vmem:[%s816_s18 + $0x18] sm:$0xff] %vm404_vm0, %v391_v32  ;;  %406 = vst.msk [vmem:[%s816_s18 + $0x8] sm:$0xff] %vm404_vm0, %v389_v33  ;;  %v345_v36 = vmul.u32 %v557_v17, %v309_v34  ;;  %v344_v38 = vmul.u32 %v557_v17, %v306_v35 }
  0xa4   : > { %vm361_vm5 = vcmp.ne.s32.totalorder %v345_v36, 0  ;;  %vm360_vm6 = vcmp.ne.s32.totalorder %v344_v38, 0 }
  0xa5   : > { %v393_v40 = vsel %vm361_vm5, %v377_v37, 0.0  ;;  %v392_v41 = vsel %vm360_vm6, %v376_v39, 0.0  ;;  %v315_v42 = vpop.permute.xlu1 %314  ;;  %v312_v43 = vpop.permute.xlu0 %311 }
  0xa6   : > { %410 = vst.msk [vmem:[%s816_s18 + $0x28] sm:$0xff] %vm404_vm0, %v393_v40  ;;  %409 = vst.msk [vmem:[%s816_s18 + $0x20] sm:$0xff] %vm404_vm0, %v392_v41  ;;  %v347_v44 = vmul.u32 %v557_v17, %v315_v42  ;;  %v346_v46 = vmul.u32 %v557_v17, %v312_v43 }
  0xa8   : > { %vm363_vm7 = vcmp.ne.s32.totalorder %v347_v44, 0  ;;  %vm362_vm8 = vcmp.ne.s32.totalorder %v346_v46, 0 }
  0xa9   : > { %v395_v49 = vsel %vm363_vm7, %v379_v45, 0.0  ;;  %v394_v50 = vsel %vm362_vm8, %v378_v47, 0.0  ;;  %v321_v51 = vpop.permute.xlu1 %320  ;;  %v318_v52 = vpop.permute.xlu0 %317 }
  0xaa   : > { %412 = vst.msk [vmem:[%s816_s18 + $0x38] sm:$0xff] %vm404_vm0, %v395_v49  ;;  %411 = vst.msk [vmem:[%s816_s18 + $0x30] sm:$0xff] %vm404_vm0, %v394_v50  ;;  %v349_v53 = vmul.u32 %v558_v48, %v321_v51  ;;  %v348_v55 = vmul.u32 %v558_v48, %v318_v52 }
  0xac   : > { %vm365_vm9 = vcmp.ne.s32.totalorder %v349_v53, 0  ;;  %vm364_vm10 = vcmp.ne.s32.totalorder %v348_v55, 0 }
  0xad   : > { %v397_v57 = vsel %vm365_vm9, %v381_v54, 0.0  ;;  %v396_v58 = vsel %vm364_vm10, %v380_v56, 0.0  ;;  %v327_v59 = vpop.permute.xlu1 %326  ;;  %v324_v60 = vpop.permute.xlu0 %323 }
  0xae   : > { %414 = vst.msk [vmem:[%s816_s18 + $0x48] sm:$0xff] %vm404_vm0, %v397_v57  ;;  %413 = vst.msk [vmem:[%s816_s18 + $0x40] sm:$0xff] %vm404_vm0, %v396_v58  ;;  %v351_v61 = vmul.u32 %v558_v48, %v327_v59  ;;  %v350_v63 = vmul.u32 %v558_v48, %v324_v60 }
  0xb0   : > { %vm367_vm11 = vcmp.ne.s32.totalorder %v351_v61, 0  ;;  %vm366_vm12 = vcmp.ne.s32.totalorder %v350_v63, 0 }
  0xb1   : > { %v399_v1 = vsel %vm367_vm11, %v383_v62, 0.0  ;;  %v398_v2 = vsel %vm366_vm12, %v382_v0, 0.0  ;;  %v333_v3 = vpop.permute.xlu1 %332  ;;  %v330_v4 = vpop.permute.xlu0 %329 }
  0xb2   : > { %416 = vst.msk [vmem:[%s816_s18 + $0x58] sm:$0xff] %vm404_vm0, %v399_v1  ;;  %415 = vst.msk [vmem:[%s816_s18 + $0x50] sm:$0xff] %vm404_vm0, %v398_v2  ;;  %v353_v5 = vmul.u32 %v558_v48, %v333_v3  ;;  %v352_v7 = vmul.u32 %v558_v48, %v330_v4 }
  0xb4   : > { %vm369_vm13 = vcmp.ne.s32.totalorder %v353_v5, 0  ;;  %vm368_vm14 = vcmp.ne.s32.totalorder %v352_v7, 0 }
  0xb5   : > { %v401_v9 = vsel %vm369_vm13, %v385_v6, 0.0  ;;  %v400_v10 = vsel %vm368_vm14, %v384_v8, 0.0  ;;  %v339_v11 = vpop.permute.xlu1 %338  ;;  %v336_v12 = vpop.permute.xlu0 %335 }
  0xb6   : > { %418 = vst.msk [vmem:[%s816_s18 + $0x68] sm:$0xff] %vm404_vm0, %v401_v9  ;;  %417 = vst.msk [vmem:[%s816_s18 + $0x60] sm:$0xff] %vm404_vm0, %v400_v10  ;;  %v355_v13 = vmul.u32 %v558_v48, %v339_v11  ;;  %v354_v15 = vmul.u32 %v558_v48, %v336_v12 }
  0xb8   : > { %vm371_vm15 = vcmp.ne.s32.totalorder %v355_v13, 0  ;;  %vm370_vm1 = vcmp.ne.s32.totalorder %v354_v15, 0 }
  0xb9   : > { %v403_v17 = vsel %vm371_vm15, %v387_v14, 0.0  ;;  %v402_v18 = vsel %vm370_vm1, %v386_v16, 0.0 }
  0xba   : > { %420 = vst.msk [vmem:[%s816_s18 + $0x78] sm:$0xff] %vm404_vm0, %v403_v17  ;;  %419 = vst.msk [vmem:[%s816_s18 + $0x70] sm:$0xff] %vm404_vm0, %v402_v18 }
  0xbb   : > { %642 = shalt.err (!%p639_p5)
}
  0xbc   : > { %s643_s5 = scalar_lea.hbm %s866_s15, 2048  ;;  %s647_s8 = scalar_lea.hbm %s925_s3, 4096 }
  0xbd   : > { %p644_p6 = scmp.ne.s32.totalorder %s866_s15, %s643_s5  ;;  %p648_p10 = scmp.lt.u32.totalorder %s866_s15, %s925_s3 }
  0xbe   : > { %p649_p11 = scmp.lt.u32.totalorder %s647_s8, %s643_s5  ;;  %p651_p13 = scmp.lt.u32.totalorder %s643_s5, %s866_s15 }
  0xbf   : > { %p645_p7 = pnand %p644_p6, %p773_p4 }
  0xc0   : > { %p650_p12 = por %p649_p11, %p648_p10 }
  0xc1   : > { %p646_p9 = pneg %p645_p7 }
  0xc2   : > { %p652_p0 = por %p651_p13, %p650_p12 }
  0xc4   : > { %p653_p1 = pnand %p652_p0, %p646_p9 }
  0xc6   : > { %656 = shalt.err (!%p653_p1)
}
  0xc7   : > { %s711_s11 = smov 128   ;;  %s712_s18 = smov 8  }
  0xc8   : > { %569 = dma.vmem_to_hbm [thread:$0]  (%p773_p4), %s868_s21, 2048, %s866_s15, %s876_s27, %s711_s11, %s711_s11, %s712_s18  }
  0xc9 PF: > { %p575_p2 = scmp.ge.s32.totalorder %s707_s17, 2  ;;  %s453_s19 = sand.u32 1, %s687_s12  }
  0xca   : > { %s454_s23 = scalar_lea.sflag [#allocation3], %s453_s19 }
  0xcb   : > { %p572_p3 = pnand %p575_p2, %p780_p8 }
  0xcd   : > { %682 = dma.done.wait (!%p572_p3), %s454_s23, 2048  }
  0xce   : > { %684 = vsyncadd (!%p572_p3), %s454_s23, 4294965248  ;;  %s16_s17 = sadd.s32 1, %s707_s17   ;;  %s928_s12 = smov %s691_s13 }
  0xcf   : > { %p13_p5 = scmp.ge.s32.totalorder %s16_s17, 4   ;;  %s929_s13 = smov %s695_s14 }
  0xd0   : > { %s930_s14 = smov %s786_s25  ;;  %s931_s15 = smov %s703_s16 }
  0xd1   : > { %s932_s16 = smov %s934_s20  ;;  %15 = sbr.rel (!%p13_p5) target bundleno = 4 (0x4), region = 73 }
  0xd8   :  { %459 = vsyncpa [#allocation3], 1 }
  0xd9   :  { %461 = vsyncpa [#allocation3 + $0x1], 1 }

</bundles_post_ra>
